<compile_context>
chip_gen: v5e
topology: v5e:2x2
jax: 0.10.0
libtpu: 0.0.40
codegen_flags: <defaults>
</compile_context>

<pallas_src>
import jax
import jax.numpy as jnp
from jax import lax
from jax.experimental import pallas as pl
from jax.experimental.pallas import tpu as pltpu

_LANES = 128


def _round_up(n, m):
    return ((n + m - 1) // m) * m


def _cdiv(a, b):
    return (a + b - 1) // b


def _calib_affine_kernel(w_ref, b_ref, x_ref, o_ref):
    """Affine on an interleaved lane-dense slab.

    w_ref: SMEM (4,)  = [w00, w01, w10, w11]   (nn.Linear weight, (out, in))
    b_ref: SMEM (2,)
    x_ref: VMEM (rb, 128)  flat row-major view of x: even lane = ch0, odd = ch1
    o_ref: VMEM (rb, 128)  same layout
    """
    z = x_ref[...]
    lane = lax.broadcasted_iota(jnp.int32, z.shape, 1)
    even = (lane & 1) == 0                      # True on channel-0 lanes

    # Partner channel: even lanes need their right neighbour, odd lanes their
    # left neighbour.  Lane rotations run on the XLU (separate issue slot);
    # the wrapped-around lanes are never selected (lane 0 is even, 127 is odd).
    right = pltpu.roll(z, 127, axis=1)          # out[:, i] = in[:, i + 1]
    left = pltpu.roll(z, 1, axis=1)             # out[:, i] = in[:, i - 1]
    partner = jnp.where(even, right, left)

    w00 = w_ref[0]
    w01 = w_ref[1]
    w10 = w_ref[2]
    w11 = w_ref[3]
    b0 = b_ref[0]
    b1 = b_ref[1]

    # nn.Linear: y0 = w00*x0 + w01*x1 + b0 ; y1 = w10*x0 + w11*x1 + b1
    w_own = jnp.where(even, w00, w11)
    w_par = jnp.where(even, w01, w10)
    bias = jnp.where(even, b0, b1)
    o_ref[...] = (w_own * z + w_par * partner + bias).astype(o_ref.dtype)


def _rows_per_block(rows, block_bytes):
    """Rows of the (rows, 128) f32 slab per grid step (multiple of 8, balanced)."""
    target = max(8, (block_bytes // (_LANES * 4)) // 8 * 8)
    if rows <= target:
        return rows                      # single full-array block (always legal)
    n_steps = _cdiv(rows, target)
    rb = _round_up(_cdiv(rows, n_steps), 8)
    return min(rb, rows)


def calib_affine2(x, weights, biases, subject_id, *,
                  block_bytes=4 << 20, use_pallas=None):
    """Subject-specific 2x2 affine transform (CalibAffine2.forward).

    x:          (B, 2) float
    weights:    (S, 2, 2) per-subject nn.Linear weight, (out_features, in_features)
    biases:     (S, 2)
    subject_id: int scalar.  NOTE: out-of-range ids are clamped to [0, S-1]
                (PyTorch ModuleList indexing would raise instead).
    """
    B = x.shape[0]
    S = weights.shape[0]

    sid = jnp.clip(jnp.asarray(subject_id, jnp.int32), 0, S - 1)
    w_sel = weights[sid].astype(jnp.float32)          # (2, 2)
    b_sel = biases[sid].astype(jnp.float32)           # (2,)

    if use_pallas is None:
        # ~16 FLOPs/row: below ~64K rows pallas_call launch + grid-step
        # overhead loses to plain XLA.
        use_pallas = B >= 65536
    if not use_pallas:
        return (x @ w_sel.T + b_sel).astype(x.dtype)

    n = 2 * B                                    # flat interleaved length
    rows = _cdiv(n, _LANES)
    n_pad = rows * _LANES

    xf = x.reshape(-1)                           # free: row-major view
    if n_pad != n:
        # Only when B % 64 != 0: pad < 128 elements to the lane granule.
        xf = jnp.pad(xf, (0, n_pad - n))
    slab = xf.reshape(rows, _LANES)              # free reshape

    rb = _rows_per_block(rows, int(block_bytes))
    grid = _cdiv(rows, rb)                       # partial last block is masked

    # in + out, each double-buffered, + headroom; fits v7x's 64 MiB VMEM.
    blk_bytes = rb * _LANES * 4
    vmem_limit = int(min(56 << 20, max(32 << 20, 4 * blk_bytes + (8 << 20))))

    out_slab = pl.pallas_call(
        _calib_affine_kernel,
        out_shape=jax.ShapeDtypeStruct((rows, _LANES), x.dtype),
        grid=(grid,),
        in_specs=[
            pl.BlockSpec(memory_space=pltpu.MemorySpace.SMEM),   # w flat (4,)
            pl.BlockSpec(memory_space=pltpu.MemorySpace.SMEM),   # b (2,)
            pl.BlockSpec((rb, _LANES), lambda i: (i, 0)),        # x slab
        ],
        out_specs=pl.BlockSpec((rb, _LANES), lambda i: (i, 0)),
        compiler_params=pltpu.CompilerParams(
            dimension_semantics=("parallel",),
            vmem_limit_bytes=vmem_limit),
    )(w_sel.reshape(4), b_sel, slab)

    y = out_slab.reshape(-1)
    if n_pad != n:
        y = y[:n]
    return y.reshape(B, 2)


if __name__ == "__main__":
    key = jax.random.PRNGKey(0)
    k_w, k_b, k1, k2, k3 = jax.random.split(key, 5)

    subjects = 4
    # Module __init__: identity weight, zero bias per subject; perturbed so the
    # kernel computes something non-trivial (forward semantics unchanged).
    eye = jnp.broadcast_to(jnp.eye(2, dtype=jnp.float32), (subjects, 2, 2))
    weights = eye + 0.01 * jax.random.normal(k_w, (subjects, 2, 2), jnp.float32)
    biases = 0.01 * jax.random.normal(k_b, (subjects, 2), jnp.float32)

    def ref(xv, sid):
        return xv @ weights[sid].T + biases[sid]

    # 1) Multi-step grid with a partial trailing block + lane-granule padding
    #    (B=4104 -> 65 slab rows -> 3 blocks of 24 rows).
    x1 = jax.random.normal(k1, (4104, 2), jnp.float32)
    o1 = jax.block_until_ready(
        calib_affine2(x1, weights, biases, 2, block_bytes=16 << 10,
                      use_pallas=True))
    assert o1.shape == x1.shape
    assert jnp.allclose(o1, ref(x1, 2), atol=1e-5, rtol=1e-5)

    # 2) Aligned batch (B % 64 == 0): zero-copy reshape, single full block.
    x2 = jax.random.normal(k2, (2048, 2), jnp.float32)
    o2 = jax.block_until_ready(
        calib_affine2(x2, weights, biases, 0, use_pallas=True))
    assert jnp.allclose(o2, ref(x2, 0), atol=1e-5, rtol=1e-5)

    # 3) Tiny non-aligned batch forced through Pallas (single (1,128) block).
    x3 = jax.random.normal(k3, (8, 2), jnp.float32)
    o3 = jax.block_until_ready(
        calib_affine2(x3, weights, biases, 1, use_pallas=True))
    assert jnp.allclose(o3, ref(x3, 1), atol=1e-5, rtol=1e-5)

    # 4) Default small-batch fast path (plain XLA; Pallas skipped).
    o4 = jax.block_until_ready(calib_affine2(x3, weights, biases, 3))
    assert jnp.allclose(o4, ref(x3, 3), atol=1e-5, rtol=1e-5)

    print("KERNEL_OK")
</pallas_src>

<mosaic_0001>
module attributes {stable_mosaic.version = 11 : i64} {
  func.func @_calib_affine_kernel(%arg0: i32, %arg1: memref<4xf32, #tpu.memory_space<smem>>, %arg2: memref<2xf32, #tpu.memory_space<smem>>, %arg3: memref<24x128xf32, #tpu.memory_space<vmem>>, %arg4: memref<24x128xf32, #tpu.memory_space<vmem>>) attributes {dimension_semantics = [#tpu.dimension_semantics<parallel>], iteration_bounds = array<i64: 3>, scalar_prefetch = 0 : i64, scratch_operands = 0 : i64, tpu.core_type = #tpu.core_type<tc>, window_params = [{transform_indices = @transform_0, window_bounds = array<i64: 4>}, {transform_indices = @transform_1, window_bounds = array<i64: 2>}, {transform_indices = @transform_2, window_bounds = array<i64: 24, 128>}, {transform_indices = @transform_3, window_bounds = array<i64: 24, 128>}]} {
    %c0 = arith.constant 0 : index
    %c0_0 = arith.constant 0 : index
    %0 = vector.load %arg3[%c0, %c0_0] : memref<24x128xf32, #tpu.memory_space<vmem>>, vector<24x128xf32>
    %1 = tpu.iota {dimensions = array<i32: 1>} : vector<24x128xi32>
    %c1_i32 = arith.constant 1 : i32
    %2 = vector.broadcast %c1_i32 : i32 to vector<24x128xi32>
    %3 = arith.andi %1, %2 : vector<24x128xi32>
    %c0_i32 = arith.constant 0 : i32
    %4 = vector.broadcast %c0_i32 : i32 to vector<24x128xi32>
    %5 = arith.cmpi eq, %3, %4 : vector<24x128xi32>
    %c127_i32 = arith.constant 127 : i32
    %6 = tpu.dynamic_rotate %0 by %c127_i32 dim 1 : vector<24x128xf32>, i32 -> vector<24x128xf32>
    %c1_i32_1 = arith.constant 1 : i32
    %7 = tpu.dynamic_rotate %0 by %c1_i32_1 dim 1 : vector<24x128xf32>, i32 -> vector<24x128xf32>
    %8 = arith.select %5, %6, %7 : vector<24x128xi1>, vector<24x128xf32>
    %c0_2 = arith.constant 0 : index
    %9 = memref.load %arg1[%c0_2] : memref<4xf32, #tpu.memory_space<smem>>
    %c1 = arith.constant 1 : index
    %10 = memref.load %arg1[%c1] : memref<4xf32, #tpu.memory_space<smem>>
    %c2 = arith.constant 2 : index
    %11 = memref.load %arg1[%c2] : memref<4xf32, #tpu.memory_space<smem>>
    %c3 = arith.constant 3 : index
    %12 = memref.load %arg1[%c3] : memref<4xf32, #tpu.memory_space<smem>>
    %c0_3 = arith.constant 0 : index
    %13 = memref.load %arg2[%c0_3] : memref<2xf32, #tpu.memory_space<smem>>
    %c1_4 = arith.constant 1 : index
    %14 = memref.load %arg2[%c1_4] : memref<2xf32, #tpu.memory_space<smem>>
    %15 = vector.broadcast %9 : f32 to vector<24x128xf32>
    %16 = vector.broadcast %12 : f32 to vector<24x128xf32>
    %17 = arith.select %5, %15, %16 : vector<24x128xi1>, vector<24x128xf32>
    %18 = vector.broadcast %10 : f32 to vector<24x128xf32>
    %19 = vector.broadcast %11 : f32 to vector<24x128xf32>
    %20 = arith.select %5, %18, %19 : vector<24x128xi1>, vector<24x128xf32>
    %21 = vector.broadcast %13 : f32 to vector<24x128xf32>
    %22 = vector.broadcast %14 : f32 to vector<24x128xf32>
    %23 = arith.select %5, %21, %22 : vector<24x128xi1>, vector<24x128xf32>
    %24 = arith.mulf %17, %0 : vector<24x128xf32>
    %25 = arith.mulf %20, %8 : vector<24x128xf32>
    %26 = arith.addf %24, %25 : vector<24x128xf32>
    %27 = arith.addf %26, %23 : vector<24x128xf32>
    %c0_5 = arith.constant 0 : index
    %c0_6 = arith.constant 0 : index
    %28 = vector.load %arg4[%c0_5, %c0_6] : memref<24x128xf32, #tpu.memory_space<vmem>>, vector<24x128xf32>
    tpu.vector_store %arg4[%c0_5, %c0_6], %27 {strides = array<i32>} : memref<24x128xf32, #tpu.memory_space<vmem>>, vector<24x128xf32>,
    return
  }
  func.func @transform_0(%arg0: i32) -> i32 {
    %c0_i32 = arith.constant 0 : i32
    %c0_i32_0 = arith.constant 0 : i32
    return %c0_i32 : i32
  }
  func.func @transform_1(%arg0: i32) -> i32 {
    %c0_i32 = arith.constant 0 : i32
    %c0_i32_0 = arith.constant 0 : i32
    return %c0_i32 : i32
  }
  func.func @transform_2(%arg0: i32) -> (i32, i32) {
    %c0_i32 = arith.constant 0 : i32
    %c0_i32_0 = arith.constant 0 : i32
    return %arg0, %c0_i32 : i32, i32
  }
  func.func @transform_3(%arg0: i32) -> (i32, i32) {
    %c0_i32 = arith.constant 0 : i32
    %c0_i32_0 = arith.constant 0 : i32
    return %arg0, %c0_i32 : i32, i32
  }
}

</mosaic_0001>

<bundles_post_ra>
// kernel: tpu_custom_call.1
= control target key start
LH: loop header
LB: loop body
LE: loop exit
PB: predicated region body
PF: predicated region fallthrough
CT: control target
= control target key end

     0   :  { %s807_s0 = inlined_call_operand.hbm [shape: f32[4], index: 0, kind: input, shape index: {}]   ;;  %s808_s1 = inlined_call_operand.hbm [shape: f32[2], index: 1, kind: input, shape index: {}]   ;;  %s809_s2 = inlined_call_operand.hbm [shape: f32[65,128], index: 2, kind: input, shape index: {}]   ;;  %s810_s3 = inlined_call_operand.hbm [shape: f32[65,128], index: 3, kind: output, shape index: {}]  }
   0x1   :  { %811 = sst [smem:[#allocation14_spill]] %s807_s0 }
   0x2   :  { %8 = vsyncpa [#allocation5], 0 }
   0x3   :  { %9 = vsyncpa [#allocation7], 0 }
   0x4   :  { %10 = vsyncpa [#allocation3], 0 }
   0x5   :  { %12 = vsyncpa [#allocation3 + $0x1], 0 }
   0x6   :  { %13 = vsyncpa [#allocation4], 0 }
   0x7   :  { %15 = vsyncpa [#allocation4 + $0x1], 0  ;;  %s640_s12 = smov 0   ;;  %s642_s13 = smov 0  }
   0x8   :  { %s644_s14 = smov 0   ;;  %s646_s15 = smov 0  }
   0x9 LB: > { %s661_s16 = sadd.s32 4294967295, %s610_s15   ;;  %s383_s17 = sadd.s32 4294967294, %s610_s15   ;;  %s610_s15 = sphi %s646_s15, %s824_s15   ;;  %s606_s14 = sphi %s644_s14, %s823_s14   ;;  %s602_s13 = sphi %s642_s13, %s822_s13   ;;  %s598_s12 = sphi %s640_s12, %s821_s12  }
   0xa   : > { %s665_s18 = sadd.s32 1, %s610_s15   ;;  %s70_s19 = sadd.s32 1, %s606_s14 }
   0xb   : > { %s67_s20 = ssub.s32 %s610_s15, %s665_s18  ;;  %p77_p0 = scmp.ne.s32.totalorder %s606_s14, %s602_s13 }
   0xc   : > { %p68_p1 = scmp.eq.s32.totalorder %s67_s20, 0  ;;  %p78_p2 = scmp.eq.s32.totalorder %s610_s15, 0 }
   0xd   : > { %p83_p3 = scmp.ne.s32.totalorder %s602_s13, %s598_s12  ;;  %p84_p4 = scmp.eq.s32.totalorder %s661_s16, 0 }
   0xe   : > { %s677_s21 = scalar_select %p68_p1, %s606_s14, %s70_s19  }
   0xf   : > { %p679_p5 = por %p78_p2, %p77_p0  ;;  %p685_p6 = por %p84_p4, %p83_p3 }
  0x10   : > { %p107_p7 = scmp.eq.s32.totalorder %s661_s16, 2  ;;  %p113_p8 = scmp.eq.s32.totalorder %s383_s17, 2 }
  0x11   : > { %p384_p9 = scmp.ge.s32.totalorder %s610_s15, 1  ;;  %p120_p10 = scmp.lt.s32.totalorder %s610_s15, 4 }
  0x12   : > { %p692_p11 = por %p107_p7, %p77_p0  ;;  %p696_p12 = por %p113_p8, %p83_p3 }
  0x13   : > { %p700_p13 = pnand %p384_p9, %p120_p10  ;;  %s817_s0 = sld [smem:[#allocation14_spill]] }
  0x14   : > { %p432_p0 = scmp.lt.s32.totalorder %s610_s15, 3  ;;  %s142_s5 = sshll.u32 %s808_s1, 4  ;;  %s143_s5 = int_to_ptr.hbm [resolvable:$true] %s142_s5 }
  0x15   : > { %p415_p1 = pneg %p700_p13  ;;  %s612_s7 = smov [#allocation2]  }
  0x16   : > { %p717_p3 = pnand %p432_p0, %p679_p5  ;;  %s153_s8 = sand.u32 1, %s606_s14  }
  0x17   : > { %p416_p2 = pnand %p415_p1, %p84_p4  ;;  %s613_s9 = smov [#allocation6]  }
  0x18   : > { %s401_s10 = smul.u32 24, %s153_s8  ;;  %s154_s30 = scalar_lea.sflag [#allocation3], %s153_s8 }
  0x19   : > { %s132_s29 = sshll.u32 %s817_s0, 4  ;;  %s399_s11 = smul.u32 24, %s610_s15  ;;  %s133_s29 = int_to_ptr.hbm [resolvable:$true] %s132_s29 }
  0x1a   : > { %418 = dma.hbm_to_smem (!%p416_p2), %s133_s29, 16, %s612_s7, [#allocation5]  }
  0x1b   : > { %421 = dma.hbm_to_smem (!%p416_p2), %s143_s5, 16, %s613_s9, [#allocation7]  }
  0x1c   : > { %s162_s20 = scalar_lea.hbm %s809_s2, %s399_s11  ;;  %s157_s27 = scalar_lea.vmem [#allocation8], %s401_s10 }
  0x1d   : > { %s165_s28 = sshll.u32 %s157_s27, 4  ;;  %s163_s22 = sshll.u32 %s162_s20, 4  ;;  %s166_s28 = int_to_ptr.vmem [resolvable:$true] %s165_s28  ;;  %s164_s22 = int_to_ptr.hbm [resolvable:$true] %s163_s22 }
  0x1e   : > { %s506_s4 = sshra.s32 %s164_s22, 4  ;;  %p510_p7 = pneg %p717_p3  ;;  %s507_s4 = int_to_ptr.hbm [resolvable:$true] %s506_s4 }
  0x1f   : > { %s508_s0 = scalar_lea.hbm %s507_s4, 24  ;;  %s513_s7 = scalar_lea.hbm %s809_s2, 72 }
  0x20   : > { %p509_p5 = scmp.ne.s32.totalorder %s507_s4, %s508_s0  ;;  %p514_p10 = scmp.lt.s32.totalorder %s507_s4, %s809_s2 }
  0x21   : > { %p515_p1 = scmp.lt.s32.totalorder %s513_s7, %s508_s0 }
  0x22   : > { %p511_p8 = pnand %p510_p7, %p509_p5 }
  0x23   : > { %p516_p0 = por %p515_p1, %p514_p10 }
  0x24   : > { %p512_p9 = pneg %p511_p8 }
  0x26   : > { %p517_p2 = pnand %p516_p0, %p512_p9 }
  0x28   : > { %520 = shalt.err (!%p517_p2)
}
  0x29   : > { %s614_s8 = smov 128   ;;  %s615_s10 = smov 8  }
  0x2a   : > { %425 = dma.hbm_to_vmem [thread:$0]  (!%p717_p3), %s164_s22, 384, %s166_s28, %s154_s30, %s614_s8, %s614_s8, %s615_s10  }
  0x2b   : > { %177 = sbr.rel (%p700_p13) target bundleno = 194 (0xc2), region = 32 }
  0x30   : > { %581 = dma.done.wait (%p84_p4), [#allocation5], 16  }
  0x31   : > { %583 = vsyncadd (%p84_p4), [#allocation5], 4294967280 }
  0x32   : > { %585 = dma.done.wait (%p84_p4), [#allocation7], 16  }
  0x33   : > { %587 = vsyncadd (%p84_p4), [#allocation7], 4294967280  ;;  %s747_s0 = sand.u32 1, %s602_s13  }
  0x34   : > { %s402_s26 = smul.u32 24, %s747_s0  ;;  %s190_s6 = scalar_lea.sflag [#allocation3], %s747_s0 }
  0x36   : > { %s193_s17 = scalar_lea.vmem [#allocation8], %s402_s26 }
  0x37   : > { %589 = dma.done.wait (%p685_p6), %s190_s6, 384  }
  0x38   : > { %591 = vsyncadd (%p685_p6), %s190_s6, 4294966912 }
  0x39   : > { %199 = sfence }
  0x3a   : > { %v222_v0 = vld [vmem:[%s193_s17 + $0x10] sm:$0xff]  ;;  %v220_v1 = vld [vmem:[%s193_s17] sm:$0xff]  ;;  %s616_s19 = smov 127   ;;  %v221_v2 = vld [vmem:[%s193_s17 + $0x8] sm:$0xff]  ;;  %s617_s20 = smov 1   ;;  %v223_v3 = vlaneseq }
  0x3b   : > { %231 = vrot.lane.b32.xlu1 %v222_v0, %s616_s19  ;;  %227 = vrot.lane.b32.xlu0 %v220_v1, %s616_s19  ;;  %s242_s27 = sld [smem:[#allocation2]]  ;;  %s400_s29 = smul.u32 24, %s661_s16 }
  0x3c   : > { %235 = vrot.lane.b32.xlu2 %v221_v2, %s617_s20  ;;  %v224_v4 = vand.u32 127, %v223_v3  ;;  %s394_s28 = sld [smem:[#allocation2 + $0x3]]  ;;  %s217_s5 = scalar_lea.vmem [#allocation9], %s402_s26 }
  0x3d   : > { %s392_s22 = sld [smem:[#allocation2 + $0x1]]  ;;  %s284_s11 = scalar_lea.hbm %s810_s3, %s400_s29 }
  0x3e   : > { %s393_s23 = sld [smem:[#allocation2 + $0x2]]  ;;  %v225_v6 = vand.u32 1, %v224_v4  ;;  %s285_s16 = sshll.u32 %s217_s5, 4  ;;  %s286_s16 = int_to_ptr.vmem [resolvable:$true] %s285_s16 }
  0x3f   : > { %s246_s30 = sld [smem:[#allocation6]]  ;;  %s287_s8 = sshll.u32 %s284_s11, 4  ;;  %s288_s8 = int_to_ptr.hbm [resolvable:$true] %s287_s8 }
  0x40   : > { %s395_s4 = sld [smem:[#allocation6 + $0x1]]  ;;  %vm757_vm0 = vcmp.eq.s32.totalorder %v225_v6, 0  ;;  %s273_s10 = scalar_lea.sflag [#allocation4], %s747_s0 }
  0x41   : > { %v248_v8 = vstv %s242_s27  ;;  %s550_s26 = sshra.s32 %s288_s8, 4  ;;  %s551_s26 = int_to_ptr.hbm [resolvable:$true] %s550_s26 }
  0x42   : > { %v249_v9 = vstv %s394_s28  ;;  %s552_s6 = scalar_lea.hbm %s551_s26, 24  ;;  %p557_p3 = scmp.lt.s32.totalorder %s551_s26, %s810_s3 }
  0x43   : > { %233 = vrot.lane.b32.xlu1 %v220_v1, %s617_s20  ;;  %229 = vrot.lane.b32.xlu0 %v221_v2, %s616_s19  ;;  %v251_v10 = vstv %s392_s22  ;;  %v250_v12 = vsel %vm757_vm0, %v248_v8, %v249_v9  ;;  %p553_p4 = scmp.ne.s32.totalorder %s551_s26, %s552_s6 }
  0x44   : > { %237 = vrot.lane.b32.xlu2 %v222_v0, %s617_s20  ;;  %v252_v11 = vstv %s393_s23  ;;  %v259_v15 = vmul.f32 %v250_v12, %v222_v0  ;;  %v257_v25 = vmul.f32 %v250_v12, %v220_v1  ;;  %v258_v26 = vmul.f32 %v250_v12, %v221_v2  ;;  %s556_s20 = scalar_lea.hbm %s810_s3, 72 }
  0x45   : > { %v253_v14 = vsel %vm757_vm0, %v251_v10, %v252_v11  ;;  %v254_v17 = vstv %s246_s30  ;;  %p554_p6 = pnand %p553_p4, %p692_p11  ;;  %p558_p5 = scmp.lt.s32.totalorder %s556_s20, %s552_s6 }
  0x46   : > { %v255_v18 = vstv %s395_s4 }
  0x47   : > { %v256_v22 = vsel %vm757_vm0, %v254_v17, %v255_v18  ;;  %p555_p13 = pneg %p554_p6  ;;  %p559_p7 = por %p558_p5, %p557_p3 }
  0x49   : > { %p560_p8 = pnand %p559_p7, %p555_p13 }
  0x96   : > { %v236_v5 = vpop.permute.xlu2 %235 }
  0x9e   : > { %v238_v13 = vpop.permute.xlu2 %237 }
  0xad   : > { %v232_v16 = vpop.permute.xlu1 %231  ;;  %v228_v19 = vpop.permute.xlu0 %227 }
  0xae   : > { %v241_v20 = vsel %vm757_vm0, %v232_v16, %v238_v13 }
  0xaf   : > { %v262_v21 = vmul.f32 %v253_v14, %v241_v20 }
  0xb1   : > { %v265_v23 = vadd.f32 %v262_v21, %v259_v15 }
  0xb3   : > { %v268_v24 = vadd.f32 %v265_v23, %v256_v22 }
  0xb5   : > { %271 = vst [vmem:[%s217_s5 + $0x10] sm:$0xff] %v268_v24  ;;  %v234_v27 = vpop.permute.xlu1 %233  ;;  %v230_v28 = vpop.permute.xlu0 %229 }
  0xb6   : > { %v239_v29 = vsel %vm757_vm0, %v228_v19, %v234_v27  ;;  %v240_v30 = vsel %vm757_vm0, %v230_v28, %v236_v5 }
  0xb7   : > { %v260_v31 = vmul.f32 %v253_v14, %v239_v29  ;;  %v261_v32 = vmul.f32 %v253_v14, %v240_v30 }
  0xb9   : > { %v263_v33 = vadd.f32 %v260_v31, %v257_v25  ;;  %v264_v34 = vadd.f32 %v261_v32, %v258_v26 }
  0xbb   : > { %v266_v35 = vadd.f32 %v263_v33, %v256_v22  ;;  %v267_v36 = vadd.f32 %v264_v34, %v256_v22 }
  0xbd   : > { %269 = vst [vmem:[%s217_s5] sm:$0xff] %v266_v35 }
  0xbe   : > { %270 = vst [vmem:[%s217_s5 + $0x8] sm:$0xff] %v267_v36 }
  0xbf   : > { %563 = shalt.err (!%p560_p8)
}
  0xc0   : > { %s618_s0 = smov 128   ;;  %s619_s22 = smov 8  }
  0xc1   : > { %413 = dma.vmem_to_hbm [thread:$0]  (%p692_p11), %s286_s16, 384, %s288_s8, %s273_s10, %s618_s0, %s618_s0, %s619_s22  }
  0xc2 PF: > { %p435_p9 = scmp.ge.s32.totalorder %s610_s15, 2  ;;  %s302_s23 = sand.u32 1, %s598_s12  }
  0xc3   : > { %s303_s30 = scalar_lea.sflag [#allocation4], %s302_s23 }
  0xc4   : > { %p427_p10 = pnand %p435_p9, %p696_p12 }
  0xc6   : > { %p428_p1 = pneg %p427_p10 }
  0xc8   : > { %593 = dma.done.wait (%p428_p1), %s303_s30, 384  }
  0xc9   : > { %595 = vsyncadd (%p428_p1), %s303_s30, 4294966912  ;;  %p18_p0 = scmp.ge.s32.totalorder %s665_s18, 5   ;;  %s821_s12 = smov %s602_s13 }
  0xca   : > { %s822_s13 = smov %s606_s14  ;;  %s823_s14 = smov %s677_s21 }
  0xcb   : > { %s824_s15 = smov %s665_s18  ;;  %20 = sbr.rel (!%p18_p0) target bundleno = 9 (0x9), region = 86 }
  0xd0   :  { %309 = vsyncpa [#allocation3], 1 }
  0xd1   :  { %311 = vsyncpa [#allocation3 + $0x1], 1 }
  0xd2   :  { %312 = vsyncpa [#allocation4], 1 }
  0xd3   :  { %314 = vsyncpa [#allocation4 + $0x1], 1 }
  0xd4   :  { %315 = vsyncpa [#allocation5], 1 }
  0xd5   :  { %317 = vsyncpa [#allocation5 + $0x1], 1 }
  0xd6   :  { %318 = vsyncpa [#allocation7], 1 }

</bundles_post_ra>
